<compile_context>
chip_gen: v7x
topology: tpu7x:2x2x1
jax: 0.10.0
libtpu: 0.0.40
codegen_flags: <defaults>
</compile_context>

<pallas_src>
import functools

import jax
import jax.numpy as jnp
from jax import lax
from jax.experimental import pallas as pl
from jax.experimental.pallas import tpu as pltpu

LANES = 128


def _device_config():
    """Per-generation tiling knobs: (max block rows, scoped VMEM, TC shards)."""
    try:
        kind = jax.devices()[0].device_kind.lower()
    except Exception:
        kind = ""
    if "v7" in kind or "7x" in kind:
        # v7x: 64 MiB physical VMEM per TensorCore, 2 TCs per chip.
        return {"max_block_rows": 4096, "vmem_limit": 40 * 1024 * 1024,
                "num_shards": 2}
    # v5e / v6e (and default): 128 MiB physical VMEM, single TensorCore.
    # TODO(synk): optional bf16 input streaming would ~halve HBM bytes here,
    # at a small precision cost on smoothed/IoU targets; left disabled.
    return {"max_block_rows": 4096, "vmem_limit": 64 * 1024 * 1024,
            "num_shards": 1}


def _focal_loss_kernel(pred_ref, true_ref, out_ref, acc_ref, *,
                       gamma, alpha, rows_valid, block_rows,
                       steps_per_shard, has_tail):
    c = pl.program_id(0)             # TensorCore shard ("parallel")
    i = pl.program_id(1)             # reduction step  ("arbitrary")
    n_steps = pl.num_programs(1)

    @pl.when(i == 0)
    def _():
        acc_ref[...] = jnp.zeros_like(acc_ref)

    x = pred_ref[...].astype(jnp.float32)
    y = true_ref[...].astype(jnp.float32)

    # 4 EUP ops/elem: exp, log1p, vrcp(approx), sqrt. e = exp(-|x|) is shared
    # between the stable-BCE log term and sigmoid.
    e = jnp.exp(-jnp.abs(x))
    bce = jnp.maximum(x, 0.0) - x * y + jnp.log1p(e)
    d = 1.0 + e
    r = pl.reciprocal(d, approx=True)
    r = r * (2.0 - d * r)                 # one Newton step -> ~f32-exact 1/(1+e)
    p = jnp.where(x >= 0.0, 1.0, e) * r   # sigmoid(x)

    # Algebraic forms (saves ~5 VPU ops/elem vs the naive p_t / alpha chains):
    #   1 - p_t      = p + y - 2*y*p
    #   alpha_factor = (1 - alpha) + y*(2*alpha - 1)
    yp = y * p
    z = p + y - 2.0 * yp
    alpha_factor = (1.0 - alpha) + y * (2.0 * alpha - 1.0)
    if gamma == 1.5:                 # default: z**1.5 == z*sqrt(z) (1 EUP op)
        mod = z * jnp.sqrt(z)
    elif gamma == 2.0:
        mod = z * z
    elif gamma == 1.0:
        mod = z
    elif gamma == 0.0:
        mod = jnp.ones_like(z)
    else:
        mod = jnp.power(z, gamma)

    loss = bce * (alpha_factor * mod)

    def _accumulate(v):
        # (block_rows,128) -> (block_rows//8, 8, 128) tree-sum into the small
        # (8,128) accumulator: same VPU adds, no full-tile acc read-mod-write.
        acc_ref[...] += v.reshape(block_rows // 8, 8, LANES).sum(axis=0)

    if has_tail:
        row_base = (c * steps_per_shard + i) * block_rows
        tile_has_pad = row_base + block_rows > rows_valid

        @pl.when(tile_has_pad)
        def _():
            rid = lax.broadcasted_iota(jnp.int32, (block_rows, LANES), 0)
            _accumulate(jnp.where(rid < rows_valid - row_base, loss, 0.0))

        @pl.when(jnp.logical_not(tile_has_pad))
        def _():
            _accumulate(loss)
    else:
        _accumulate(loss)

    # Single cross-lane/sublane reduction + SMEM scalar store per shard.
    @pl.when(i == n_steps - 1)
    def _():
        out_ref[0, 0] = jnp.sum(acc_ref[...])


def _elementwise_focal_jnp(x, y, gamma, alpha):
    """Plain-jnp focal BCE terms (used only for the <128-element remainder)."""
    x = x.astype(jnp.float32)
    y = y.astype(jnp.float32)
    bce = jnp.maximum(x, 0.0) - x * y + jnp.log1p(jnp.exp(-jnp.abs(x)))
    p = jax.nn.sigmoid(x)
    p_t = y * p + (1.0 - y) * (1.0 - p)
    af = y * alpha + (1.0 - y) * (1.0 - alpha)
    return bce * af * (1.0 - p_t) ** gamma


def focal_loss(pred, true, gamma=1.5, alpha=0.25, reduction="mean"):
    """Pallas-TPU FocalLoss forward. pred/true: any shape (e.g. NCHW), same shape."""
    assert pred.shape == true.shape
    n_elem = pred.size

    flat_pred = jnp.ravel(pred)
    flat_true = jnp.ravel(true)

    rows = n_elem // LANES           # 128-aligned prefix handled by the kernel
    main = rows * LANES
    tail = n_elem - main

    total = jnp.zeros((), jnp.float32)

    if rows > 0:
        cfg = _device_config()
        p2 = (flat_pred[:main] if tail else flat_pred).reshape(rows, LANES)
        t2 = (flat_true[:main] if tail else flat_true).reshape(rows, LANES)

        block_rows = min(cfg["max_block_rows"], ((rows + 7) // 8) * 8)
        total_blocks = (rows + block_rows - 1) // block_rows
        num_shards = max(1, min(cfg["num_shards"], total_blocks))
        steps_per_shard = (total_blocks + num_shards - 1) // num_shards
        covered_rows = num_shards * steps_per_shard * block_rows
        has_tail = covered_rows != rows
        max_blk = total_blocks - 1

        # Clamp the block index so shards past the data re-read the last real
        # block (their contribution is zeroed by the in-kernel row mask).
        def _in_map(c, i):
            return (jnp.minimum(c * steps_per_shard + i, max_blk), 0)

        in_spec = pl.BlockSpec((block_rows, LANES), _in_map)

        kernel = functools.partial(
            _focal_loss_kernel,
            gamma=float(gamma), alpha=float(alpha),
            rows_valid=rows, block_rows=block_rows,
            steps_per_shard=steps_per_shard, has_tail=has_tail)

        partials = pl.pallas_call(
            kernel,
            out_shape=jax.ShapeDtypeStruct((num_shards, 1), jnp.float32),
            grid_spec=pltpu.PrefetchScalarGridSpec(
                num_scalar_prefetch=0,
                grid=(num_shards, steps_per_shard),
                in_specs=[in_spec, in_spec],
                out_specs=pl.BlockSpec((1, 1), lambda c, i: (c, 0),
                                       memory_space=pltpu.SMEM),
                scratch_shapes=[pltpu.VMEM((8, LANES), jnp.float32)]),
            compiler_params=pltpu.CompilerParams(
                dimension_semantics=("parallel", "arbitrary"),
                vmem_limit_bytes=cfg["vmem_limit"]),
        )(p2, t2)
        total = total + jnp.sum(partials)

    if tail > 0:
        # <=127 leftover elements: summed in the wrapper instead of padding
        # (and re-copying) both full input tensors.
        total = total + jnp.sum(
            _elementwise_focal_jnp(flat_pred[main:], flat_true[main:],
                                   float(gamma), float(alpha)))

    if reduction == "mean":
        return total / jnp.float32(n_elem)
    elif reduction == "sum":
        return total
    else:
        # TODO(synk): reduction='none' would need an elementwise-output kernel
        # variant; yolov5 uses BCEWithLogitsLoss(reduction='mean') in practice.
        raise NotImplementedError("reduction='none' not implemented in kernel path")


def _focal_loss_ref(pred, true, gamma=1.5, alpha=0.25):
    """Pure-JAX reference mirroring the PyTorch module (reduction='mean')."""
    x = pred.astype(jnp.float32)
    y = true.astype(jnp.float32)
    bce = jnp.maximum(x, 0.0) - x * y + jnp.log1p(jnp.exp(-jnp.abs(x)))
    p = jax.nn.sigmoid(x)
    p_t = y * p + (1 - y) * (1 - p)
    alpha_factor = y * alpha + (1 - y) * (1 - alpha)
    modulating_factor = (1.0 - p_t) ** gamma
    return jnp.mean(bce * alpha_factor * modulating_factor)


if __name__ == "__main__":
    key = jax.random.PRNGKey(0)
    k1, k2 = jax.random.split(key)

    # NCHW logits + binary-ish targets (as in yolov5 objectness/cls loss).
    pred = jax.random.normal(k1, (2, 4, 16, 16), dtype=jnp.float32) * 2.0
    true = (jax.random.uniform(k2, (2, 4, 16, 16)) > 0.7).astype(jnp.float32)

    out = focal_loss(pred, true, gamma=1.5, alpha=0.25, reduction="mean")
    out = jax.block_until_ready(out)

    ref = _focal_loss_ref(pred, true)
    assert jnp.allclose(out, ref, rtol=1e-5, atol=1e-6), (out, ref)

    print("KERNEL_OK")
</pallas_src>

<mosaic_0001>
module attributes {stable_mosaic.version = 11 : i64} {
  func.func @_focal_loss_kernel(%arg0: i32, %arg1: i32, %arg2: memref<16x128xf32, #tpu.memory_space<vmem>>, %arg3: memref<16x128xf32, #tpu.memory_space<vmem>>, %arg4: memref<1x1xf32, #tpu.memory_space<smem>>, %arg5: memref<8x128xf32, #tpu.memory_space<vmem>>) attributes {dimension_semantics = [#tpu.dimension_semantics<parallel>, #tpu.dimension_semantics<arbitrary>], iteration_bounds = array<i64: 1, 1>, scalar_prefetch = 0 : i64, scratch_operands = 1 : i64, tpu.core_type = #tpu.core_type<tc>, window_params = [{transform_indices = @transform_0, window_bounds = array<i64: 16, 128>}, {transform_indices = @transform_1, window_bounds = array<i64: 16, 128>}, {transform_indices = @transform_2, window_bounds = array<i64: 1, 1>}]} {
    %c0_i32 = arith.constant 0 : i32
    %0 = arith.cmpi eq, %arg1, %c0_i32 : i32
    %1 = arith.extui %0 : i1 to i32
    %c0_i32_0 = arith.constant 0 : i32
    %2 = arith.cmpi ne, %1, %c0_i32_0 : i32
    scf.if %2 {
      %cst_19 = arith.constant 0.000000e+00 : f32
      %48 = vector.broadcast %cst_19 : f32 to vector<8x128xf32>
      %c0_20 = arith.constant 0 : index
      %c0_21 = arith.constant 0 : index
      %49 = vector.load %arg5[%c0_20, %c0_21] : memref<8x128xf32, #tpu.memory_space<vmem>>, vector<8x128xf32>
      tpu.vector_store %arg5[%c0_20, %c0_21], %48 {strides = array<i32>} : memref<8x128xf32, #tpu.memory_space<vmem>>, vector<8x128xf32>,
    } else {
    }
    %c0 = arith.constant 0 : index
    %c0_1 = arith.constant 0 : index
    %3 = vector.load %arg2[%c0, %c0_1] : memref<16x128xf32, #tpu.memory_space<vmem>>, vector<16x128xf32>
    %c0_2 = arith.constant 0 : index
    %c0_3 = arith.constant 0 : index
    %4 = vector.load %arg3[%c0_2, %c0_3] : memref<16x128xf32, #tpu.memory_space<vmem>>, vector<16x128xf32>
    %5 = math.absf %3 : vector<16x128xf32>
    %cst = arith.constant 0.000000e+00 : f32
    %6 = vector.broadcast %cst : f32 to vector<16x128xf32>
    %7 = arith.subf %6, %5 : vector<16x128xf32>
    %8 = math.exp %7 : vector<16x128xf32>
    %cst_4 = arith.constant 0.000000e+00 : f32
    %9 = vector.broadcast %cst_4 : f32 to vector<16x128xf32>
    %10 = arith.maximumf %3, %9 : vector<16x128xf32>
    %11 = arith.mulf %3, %4 : vector<16x128xf32>
    %12 = arith.subf %10, %11 : vector<16x128xf32>
    %13 = math.log1p %8 : vector<16x128xf32>
    %14 = arith.addf %12, %13 : vector<16x128xf32>
    %cst_5 = arith.constant 1.000000e+00 : f32
    %15 = vector.broadcast %cst_5 : f32 to vector<16x128xf32>
    %16 = arith.addf %15, %8 : vector<16x128xf32>
    %17 = tpu.reciprocal %16 {approx = true} : vector<16x128xf32> -> vector<16x128xf32>
    %18 = arith.mulf %16, %17 : vector<16x128xf32>
    %cst_6 = arith.constant 2.000000e+00 : f32
    %19 = vector.broadcast %cst_6 : f32 to vector<16x128xf32>
    %20 = arith.subf %19, %18 : vector<16x128xf32>
    %21 = arith.mulf %17, %20 : vector<16x128xf32>
    %cst_7 = arith.constant 0.000000e+00 : f32
    %22 = vector.broadcast %cst_7 : f32 to vector<16x128xf32>
    %23 = arith.cmpf oge, %3, %22 : vector<16x128xf32>
    %cst_8 = arith.constant 1.000000e+00 : f32
    %24 = vector.broadcast %cst_8 : f32 to vector<16x128xf32>
    %25 = arith.select %23, %24, %8 : vector<16x128xi1>, vector<16x128xf32>
    %26 = arith.mulf %25, %21 : vector<16x128xf32>
    %27 = arith.mulf %4, %26 : vector<16x128xf32>
    %28 = arith.addf %26, %4 : vector<16x128xf32>
    %cst_9 = arith.constant 2.000000e+00 : f32
    %29 = vector.broadcast %cst_9 : f32 to vector<16x128xf32>
    %30 = arith.mulf %29, %27 : vector<16x128xf32>
    %31 = arith.subf %28, %30 : vector<16x128xf32>
    %cst_10 = arith.constant -5.000000e-01 : f32
    %32 = vector.broadcast %cst_10 : f32 to vector<16x128xf32>
    %33 = arith.mulf %4, %32 : vector<16x128xf32>
    %cst_11 = arith.constant 7.500000e-01 : f32
    %34 = vector.broadcast %cst_11 : f32 to vector<16x128xf32>
    %35 = arith.addf %34, %33 : vector<16x128xf32>
    %36 = math.sqrt %31 : vector<16x128xf32>
    %37 = arith.mulf %31, %36 : vector<16x128xf32>
    %38 = arith.mulf %35, %37 : vector<16x128xf32>
    %39 = arith.mulf %14, %38 : vector<16x128xf32>
    %c0_12 = arith.constant 0 : index
    %c0_13 = arith.constant 0 : index
    %40 = vector.load %arg5[%c0_12, %c0_13] : memref<8x128xf32, #tpu.memory_space<vmem>>, vector<8x128xf32>
    %41 = vector.shape_cast %39 : vector<16x128xf32> to vector<2x8x128xf32>
    %cst_14 = arith.constant dense<0.000000e+00> : vector<8x128xf32>
    %42 = vector.multi_reduction <add>, %41, %cst_14 [0] : vector<2x8x128xf32> to vector<8x128xf32>
    %43 = arith.addf %40, %42 : vector<8x128xf32>
    %c0_15 = arith.constant 0 : index
    %c0_16 = arith.constant 0 : index
    %44 = vector.load %arg5[%c0_15, %c0_16] : memref<8x128xf32, #tpu.memory_space<vmem>>, vector<8x128xf32>
    tpu.vector_store %arg5[%c0_15, %c0_16], %43 {strides = array<i32>} : memref<8x128xf32, #tpu.memory_space<vmem>>, vector<8x128xf32>,
    %c0_i32_17 = arith.constant 0 : i32
    %45 = arith.cmpi eq, %arg1, %c0_i32_17 : i32
    %46 = arith.extui %45 : i1 to i32
    %c0_i32_18 = arith.constant 0 : i32
    %47 = arith.cmpi ne, %46, %c0_i32_18 : i32
    scf.if %47 {
      %c0_19 = arith.constant 0 : index
      %c0_20 = arith.constant 0 : index
      %48 = vector.load %arg5[%c0_19, %c0_20] : memref<8x128xf32, #tpu.memory_space<vmem>>, vector<8x128xf32>
      %49 = vector.shape_cast %48 : vector<8x128xf32> to vector<1x8x128xf32>
      %cst_21 = arith.constant dense<0.000000e+00> : vector<1xf32>
      %50 = vector.multi_reduction <add>, %49, %cst_21 [1, 2] : vector<1x8x128xf32> to vector<1xf32>
      %51 = vector.shape_cast %50 : vector<1xf32> to vector<1x1x1xf32>
      %52 = vector.extract %51[0, 0, 0] : f32 from vector<1x1x1xf32>
      %c0_22 = arith.constant 0 : index
      %c0_23 = arith.constant 0 : index
      %53 = memref.load %arg4[%c0_22, %c0_23] : memref<1x1xf32, #tpu.memory_space<smem>>
      memref.store %52, %arg4[%c0_22, %c0_23] : memref<1x1xf32, #tpu.memory_space<smem>>
    } else {
    }
    return
  }
  func.func @transform_0(%arg0: i32, %arg1: i32) -> (i32, i32) {
    %c1_i32 = arith.constant 1 : i32
    %0 = arith.muli %arg0, %c1_i32 : i32
    %1 = arith.addi %0, %arg1 : i32
    %c0_i32 = arith.constant 0 : i32
    %2 = arith.minsi %1, %c0_i32 : i32
    %c0_i32_0 = arith.constant 0 : i32
    %c0_i32_1 = arith.constant 0 : i32
    return %2, %c0_i32_0 : i32, i32
  }
  func.func @transform_1(%arg0: i32, %arg1: i32) -> (i32, i32) {
    %c1_i32 = arith.constant 1 : i32
    %0 = arith.muli %arg0, %c1_i32 : i32
    %1 = arith.addi %0, %arg1 : i32
    %c0_i32 = arith.constant 0 : i32
    %2 = arith.minsi %1, %c0_i32 : i32
    %c0_i32_0 = arith.constant 0 : i32
    %c0_i32_1 = arith.constant 0 : i32
    return %2, %c0_i32_0 : i32, i32
  }
  func.func @transform_2(%arg0: i32, %arg1: i32) -> (i32, i32) {
    %c0_i32 = arith.constant 0 : i32
    %c0_i32_0 = arith.constant 0 : i32
    return %arg0, %c0_i32 : i32, i32
  }
}

</mosaic_0001>

<bundles_post_ra>
// kernel: tpu_custom_call.1
= control target key start
LH: loop header
LB: loop body
LE: loop exit
PB: predicated region body
PF: predicated region fallthrough
CT: control target
= control target key end

     0   :  { %7 = vsyncpa [#allocation4], 0  ;;  %s346_s0 = inlined_call_operand.hbm [shape: f32[16,128], index: 0, kind: input, shape index: {}]   ;;  %s347_s1 = inlined_call_operand.hbm [shape: f32[16,128], index: 1, kind: input, shape index: {}]   ;;  %s348_s2 = inlined_call_operand.hbm [shape: f32[1,1], index: 2, kind: output, shape index: {}]  }
   0x1   :  { %8 = vsyncpa [#allocation7], 0 }
   0x2   :  { %9 = vsyncpa [#allocation5], 0  ;;  %s272_s9 = smov [#allocation3]   ;;  %s212_s13 = scalar_lea.hbm %s346_s0, 256 }
   0x3   :  { %s21_s10 = sshll.u32 %s272_s9, 4  ;;  %p213_p0 = scmp.ne.s32.totalorder %s346_s0, %s212_s13  ;;  %s22_s10 = int_to_ptr.vmem [resolvable:$true] %s21_s10 }
   0x4   :  { %p216_p1 = scmp.lt.u32.totalorder %s212_s13, %s346_s0 }
   0x6   :  { %p218_p2 = pnand %p216_p1, %p213_p0 }
   0x8   :  { %221 = shalt.err (!%p218_p2)
}
   0x9   :  { %s222_s18 = scalar_lea.vmem %s22_s10, 256  ;;  %p227_p4 = scmp.lt.s32.totalorder %s22_s10, %s22_s10 }
   0xa   :  { %p223_p3 = scmp.ne.s32.totalorder %s22_s10, %s222_s18  ;;  %p228_p5 = scmp.lt.s32.totalorder %s222_s18, %s222_s18 }
   0xc   :  { %p229_p6 = por %p228_p5, %p227_p4 }
   0xe   :  { %p230_p7 = pnand %p229_p6, %p223_p3 }
  0x10   :  { %233 = shalt.err (!%p230_p7)
}
  0x11   :  { %s273_s19 = smov 128   ;;  %s274_s20 = smov 8  }
  0x12   :  { %27 = dma.hbm_to_vmem [thread:$0]  %s346_s0, 256, %s22_s10, [#allocation4], %s273_s19, %s273_s19, %s274_s20  }
  0x13   :  { %s275_s23 = smov [#allocation6]   ;;  %s234_s27 = scalar_lea.hbm %s347_s1, 256 }
  0x14   :  { %s39_s24 = sshll.u32 %s275_s23, 4  ;;  %p235_p8 = scmp.ne.s32.totalorder %s347_s1, %s234_s27  ;;  %s40_s24 = int_to_ptr.vmem [resolvable:$true] %s39_s24 }
  0x15   :  { %p238_p9 = scmp.lt.u32.totalorder %s234_s27, %s347_s1 }
  0x17   :  { %p240_p10 = pnand %p238_p9, %p235_p8 }
  0x19   :  { %243 = shalt.err (!%p240_p10)
}
  0x1a   :  { %s244_s4 = scalar_lea.vmem %s40_s24, 256  ;;  %p249_p12 = scmp.lt.s32.totalorder %s40_s24, %s40_s24 }
  0x1b   :  { %p245_p11 = scmp.ne.s32.totalorder %s40_s24, %s244_s4  ;;  %p250_p13 = scmp.lt.s32.totalorder %s244_s4, %s244_s4 }
  0x1d   :  { %p251_p0 = por %p250_p13, %p249_p12 }
  0x1f   :  { %p252_p1 = pnand %p251_p0, %p245_p11 }
  0x21   :  { %255 = shalt.err (!%p252_p1)
}
  0x22   :  { %45 = dma.hbm_to_vmem [thread:$0]  %s347_s1, 256, %s40_s24, [#allocation7], %s273_s19, %s273_s19, %s274_s20  }
  0x23   :  { %266 = dma.done.wait [#allocation4], 256  }
  0x24   :  { %267 = vsyncadd [#allocation4], 4294967040 }
  0x25   :  { %268 = dma.done.wait [#allocation7], 256  }
  0x26   :  { %269 = vsyncadd [#allocation7], 4294967040  ;;  %v65_v0 = vld [vmem:[#allocation3] sm:$0xff]  ;;  %v316_v1 = vld [vmem:[#allocation3 + $0x8] sm:$0xff]  ;;  %s256_s8 = scalar_lea.hbm %s348_s2, 16 }
  0x27   :  { %v69_v2 = vand.u32 2147483647, %v65_v0  ;;  %v70_v3 = vand.u32 2147483647, %v316_v1  ;;  %vm113_vm0 = vcmp.ge.f32.partialorder %v65_v0, 0.0  ;;  %vm114_vm1 = vcmp.ge.f32.partialorder %v316_v1, 0.0  ;;  %p257_p2 = scmp.ne.s32.totalorder %s348_s2, %s256_s8  ;;  %p260_p3 = scmp.lt.u32.totalorder %s256_s8, %s348_s2 }
  0x28   :  { %v67_v21 = vld [vmem:[#allocation6] sm:$0xff]  ;;  %v68_v23 = vld [vmem:[#allocation6 + $0x8] sm:$0xff]  ;;  %v77_v36 = vmax.f32 %v65_v0, 0.0  ;;  %v78_v44 = vmax.f32 %v316_v1, 0.0 }
  0x29   :  { %v71_v4 = vsub.f32 0.0, %v69_v2  ;;  %v72_v5 = vsub.f32 0.0, %v70_v3  ;;  %v79_v37 = vmul.f32 %v67_v21, %v65_v0  ;;  %v80_v45 = vmul.f32 %v68_v23, %v316_v1  ;;  %p262_p4 = pnand %p260_p3, %p257_p2 }
  0x2a   :  { %v127_v52 = vmul.f32 -0.5, %v67_v21  ;;  %v128_v55 = vmul.f32 -0.5, %v68_v23 }
  0x2b   :  { %v73_v6 = vmul.f32 1.442695, %v71_v4  ;;  %v75_v7 = vmul.f32 1.442695, %v72_v5  ;;  %v81_v46 = vsub.f32 %v77_v36, %v79_v37  ;;  %v82_v60 = vsub.f32 %v78_v44, %v80_v45 }
  0x2c   :  { %v129_v0 = vadd.f32 0.75, %v127_v52  ;;  %v130_v2 = vadd.f32 0.75, %v128_v55 }
  0x2d   :  { %196 = vpow2.f32 %v73_v6 }
  0x2e   :  { %198 = vpow2.f32 %v75_v7 }
  0x37   :  { %v197_v8 = vpop.eup %196 }
  0x38   :  { %v199_v9 = vpop.eup %198  ;;  %v83_v10 = vadd.f32 1.0, %v197_v8  ;;  %v115_v18 = vsel %vm113_vm0, 1.0, %v197_v8  ;;  %v86_v34 = vmul.f32 -0.5, %v197_v8  ;;  %v89_v40 = vand.u32 2147483647, %v197_v8 }
  0x39   :  { %v92_v11 = vadd.f32 1.0, %v199_v9  ;;  %v116_v20 = vsel %vm114_vm1, 1.0, %v199_v9  ;;  %v95_v35 = vmul.f32 -0.5, %v199_v9  ;;  %v98_v43 = vand.u32 2147483647, %v199_v9 }
  0x3a   :  { %200 = vrcp.f32 %v83_v10  ;;  %v87_v38 = vadd.f32 1.0, %v86_v34  ;;  %vm322_vm2 = vcmp.lt.f32.partialorder %v89_v40, 0.0004427343 }
  0x3b   :  { %202 = vrcp.f32 %v92_v11  ;;  %v96_v41 = vadd.f32 1.0, %v95_v35  ;;  %vm326_vm3 = vcmp.lt.f32.partialorder %v98_v43, 0.0004427343 }
  0x3c   :  { %204 = vlog2.f32 %v83_v10  ;;  %v88_v48 = vmul.f32 %v197_v8, %v87_v38 }
  0x3d   :  { %206 = vlog2.f32 %v92_v11  ;;  %v97_v51 = vmul.f32 %v199_v9, %v96_v41 }
  0x44   :  { %v201_v12 = vpop.eup %200 }
  0x45   :  { %v203_v13 = vpop.eup %202  ;;  %v107_v14 = vmul.f32 %v201_v12, %v83_v10 }
  0x46   :  { %v108_v15 = vmul.f32 %v203_v13, %v92_v11  ;;  %v205_v39 = vpop.eup %204 }
  0x47   :  { %v109_v16 = vsub.f32 2.0, %v107_v14  ;;  %v207_v42 = vpop.eup %206  ;;  %v85_v47 = vmul.f32 0.6931472, %v205_v39 }
  0x48   :  { %v110_v17 = vsub.f32 2.0, %v108_v15  ;;  %v94_v50 = vmul.f32 0.6931472, %v207_v42 }
  0x49   :  { %v111_v19 = vmul.f32 %v201_v12, %v109_v16  ;;  %v91_v61 = vsel %vm322_vm2, %v88_v48, %v85_v47 }
  0x4a   :  { %v112_v22 = vmul.f32 %v203_v13, %v110_v17  ;;  %v100_v63 = vsel %vm326_vm3, %v97_v51, %v94_v50  ;;  %v101_v5 = vadd.f32 %v91_v61, %v81_v46 }
  0x4b   :  { %v117_v24 = vmul.f32 %v115_v18, %v111_v19  ;;  %v102_v8 = vadd.f32 %v100_v63, %v82_v60 }
  0x4c   :  { %v118_v25 = vmul.f32 %v116_v20, %v112_v22 }
  0x4d   :  { %v119_v26 = vmul.f32 %v117_v24, %v67_v21  ;;  %v121_v27 = vadd.f32 %v117_v24, %v67_v21 }
  0x4e   :  { %v120_v28 = vmul.f32 %v118_v25, %v68_v23  ;;  %v122_v29 = vadd.f32 %v118_v25, %v68_v23 }
  0x4f   :  { %v123_v30 = vmul.f32 2.0, %v119_v26 }
  0x50   :  { %v124_v31 = vmul.f32 2.0, %v120_v28 }
  0x51   :  { %v125_v32 = vsub.f32 %v121_v27, %v123_v30 }
  0x52   :  { %v126_v33 = vsub.f32 %v122_v29, %v124_v31 }
  0x53   :  { %208 = vrsqrt.f32 %v125_v32  ;;  %vm133_vm4 = vcmp.eq.f32.partialorder %v125_v32, inf  ;;  %v136_v56 = vand.u32 2147483648, %v125_v32  ;;  %vm135_vm5 = vcmp.eq.f32.partialorder %v125_v32, 0.0 }
  0x54   :  { %210 = vrsqrt.f32 %v126_v33  ;;  %vm140_vm6 = vcmp.eq.f32.partialorder %v126_v33, inf  ;;  %v143_v59 = vand.u32 2147483648, %v126_v33  ;;  %vm142_vm7 = vcmp.eq.f32.partialorder %v126_v33, 0.0 }
  0x5d   :  { %v209_v53 = vpop.eup %208 }
  0x5e   :  { %v211_v57 = vpop.eup %210  ;;  %v132_v58 = vmul.f32 %v209_v53, %v125_v32 }
  0x5f   :  { %v139_v62 = vmul.f32 %v211_v57, %v126_v33 }
  0x60   :  { %v134_v1 = vsel %vm133_vm4, %v125_v32, %v132_v58 }
  0x61   :  { %v137_v3 = vsel %vm135_vm5, %v136_v56, %v134_v1  ;;  %v141_v4 = vsel %vm140_vm6, %v126_v33, %v139_v62 }
  0x62   :  { %v144_v6 = vsel %vm142_vm7, %v143_v59, %v141_v4  ;;  %v145_v7 = vmul.f32 %v137_v3, %v125_v32 }
  0x63   :  { %v146_v9 = vmul.f32 %v144_v6, %v126_v33 }
  0x64   :  { %v147_v10 = vmul.f32 %v145_v7, %v129_v0 }
  0x65   :  { %v148_v11 = vmul.f32 %v146_v9, %v130_v2 }
  0x66   :  { %v149_v12 = vmul.f32 %v147_v10, %v101_v5 }
  0x67   :  { %v150_v13 = vmul.f32 %v148_v11, %v102_v8 }
  0x69   :  { %v152_v14 = vadd.f32 %v150_v13, %v149_v12 }
  0x6b   :  { %159 = vadd.xlane.f32.xlu0 %v152_v14 }
  0xf8   :  { %v160_v15 = vpop.xlane.xlu0 %159 }
  0xf9   :  { %v161_v16 = vrot.slane %v160_v15, 4 }
  0xfb   :  { %v162_v17 = vadd.f32 %v161_v16, %v160_v15 }
  0xfd   :  { %v163_v18 = vrot.slane %v162_v17, 2 }
  0xff   :  { %v164_v19 = vadd.f32 %v163_v18, %v162_v17 }
 0x101   :  { %v165_v20 = vrot.slane %v164_v19, 1 }
 0x103   :  { %v166_v21 = vadd.f32 %v165_v20, %v164_v19 }
 0x105   :  { %189 = vpush %v166_v21 }
 0x136   :  { %s190_s1 = spop %189 }
 0x137   :  { %169 = sst [smem:[#allocation8]] %s190_s1 }
 0x138   :  { %265 = shalt.err (!%p262_p4)
}
 0x139   :  { %s276_s13 = smov [#allocation8]  }
 0x13a   :  { %177 = dma.smem_to_hbm %s276_s13, 16, %s348_s2, [#allocation5]  }
 0x13b   :  { %270 = dma.done.wait [#allocation5], 16  }
 0x13c   :  { %271 = vsyncadd [#allocation5], 4294967280 }
 0x13d   :  { %181 = sfence }
 0x13e   :  { %182 = vsyncpa [#allocation4], 1 }
 0x13f   :  { %183 = vsyncpa [#allocation7], 1 }
 0x140   :  { %184 = vsyncpa [#allocation5], 1 }

</bundles_post_ra>
